<compile_context>
chip_gen: v6e
topology: v6e:2x2x1
jax: 0.10.0
libtpu: 0.0.40
codegen_flags: <defaults>
</compile_context>

<pallas_src>
import jax
import jax.numpy as jnp
from jax.experimental import pallas as pl
from jax.experimental.pallas import tpu as pltpu


def _round_up(x, m):
    return ((x + m - 1) // m) * m


# --------------------------------------------------------------------------
# Kernel A: hidden = text @ weight   (folded to one (B*N_pad, Fin_pad) matmul)
# --------------------------------------------------------------------------
def _hidden_kernel(x_ref, w_ref, o_ref):
    o_ref[...] = jnp.dot(
        x_ref[...], w_ref[...], preferred_element_type=jnp.float32
    ).astype(o_ref.dtype)


def _compute_hidden(x2d, w_p, tile_m):
    M, Fin_p = x2d.shape
    Fout_p = w_p.shape[1]
    return pl.pallas_call(
        _hidden_kernel,
        out_shape=jax.ShapeDtypeStruct((M, Fout_p), jnp.float32),
        grid=(M // tile_m,),
        in_specs=[
            pl.BlockSpec((tile_m, Fin_p), lambda i: (i, 0)),
            pl.BlockSpec((Fin_p, Fout_p), lambda i: (0, 0)),
        ],
        out_specs=pl.BlockSpec((tile_m, Fout_p), lambda i: (i, 0)),
        compiler_params=pltpu.CompilerParams(
            dimension_semantics=("parallel",),
            vmem_limit_bytes=32 * 1024 * 1024,
        ),
    )(x2d, w_p)


# --------------------------------------------------------------------------
# Kernel B: out = (adj @ hidden) / (rowsum(adj) + 1) + bias
#   grid = (B, row-tiles, K-tiles); K is the reduction axis (last, arbitrary).
# --------------------------------------------------------------------------
def _aggregate_kernel(adj_ref, h_ref, b_ref, o_ref, acc_ref, den_ref):
    k = pl.program_id(2)

    @pl.when(k == 0)
    def _init():
        acc_ref[...] = jnp.zeros_like(acc_ref)
        den_ref[...] = jnp.zeros_like(den_ref)

    adj = adj_ref[...]                                       # (tile_n, tile_k)
    # MXU: accumulate adj-tile @ hidden-tile into the resident f32 accumulator.
    acc_ref[...] += jnp.dot(adj, h_ref[...], preferred_element_type=jnp.float32)
    # Row-sum denominator accumulated alongside the same K loop (adj read once).
    den_ref[...] += jnp.sum(adj, axis=1, keepdims=True)

    @pl.when(k == pl.num_programs(2) - 1)
    def _finalize():
        denom = den_ref[...] + 1.0
        o_ref[...] = (acc_ref[...] / denom + b_ref[...]).astype(o_ref.dtype)


# --------------------------------------------------------------------------
# Wrapper: padding / tiling / slicing
# --------------------------------------------------------------------------
def graph_convolution(text, adj, weight, bias=None):
    B, N, Fin = text.shape
    Fout = weight.shape[1]

    # Lane-dense feature dims.
    Fin_p = _round_up(Fin, 128)
    Fout_p = _round_up(Fout, 128)

    # Node-dim tiling: cap tiles at 512 so double-buffered adj tiles
    # (512*512*4B = 1 MiB each) fit comfortably in VMEM on every generation.
    tile = min(_round_up(N, 128), 512)
    N_p = _round_up(N, tile)

    f32 = jnp.float32
    text_p = jnp.pad(text.astype(f32), ((0, 0), (0, N_p - N), (0, Fin_p - Fin)))
    adj_p = jnp.pad(adj.astype(f32), ((0, 0), (0, N_p - N), (0, N_p - N)))
    w_p = jnp.pad(weight.astype(f32), ((0, Fin_p - Fin), (0, Fout_p - Fout)))
    if bias is None:
        b_p = jnp.zeros((1, Fout_p), f32)
    else:
        b_p = jnp.pad(bias.reshape(1, Fout).astype(f32),
                      ((0, 0), (0, Fout_p - Fout)))

    # hidden = text @ W, computed once over the batch-packed (B*N_p, Fin_p) view.
    M = B * N_p
    tile_m = next(t for t in (512, 256, 128) if M % t == 0)
    hidden = _compute_hidden(text_p.reshape(M, Fin_p), w_p, tile_m)
    hidden = hidden.reshape(B, N_p, Fout_p)

    n_tiles = N_p // tile

    out_p = pl.pallas_call(
        _aggregate_kernel,
        out_shape=jax.ShapeDtypeStruct((B, N_p, Fout_p), f32),
        grid=(B, n_tiles, n_tiles),
        in_specs=[
            # adj: (row-tile, K-tile); batch dim squeezed out of the kernel view.
            pl.BlockSpec((None, tile, tile), lambda b, i, k: (b, i, k)),
            # hidden: K-tile of rows, full lane-dense Fout_p.
            pl.BlockSpec((None, tile, Fout_p), lambda b, i, k: (b, k, 0)),
            # bias: small resident tile.
            pl.BlockSpec((1, Fout_p), lambda b, i, k: (0, 0)),
        ],
        out_specs=pl.BlockSpec((None, tile, Fout_p), lambda b, i, k: (b, i, 0)),
        scratch_shapes=[
            pltpu.VMEM((tile, Fout_p), jnp.float32),   # adj @ hidden accumulator
            pltpu.VMEM((tile, 1), jnp.float32),        # denom accumulator
        ],
        compiler_params=pltpu.CompilerParams(
            dimension_semantics=("parallel", "parallel", "arbitrary"),
            vmem_limit_bytes=32 * 1024 * 1024,
        ),
    )(adj_p, hidden, b_p)

    return out_p[:, :N, :Fout].astype(text.dtype)


# --------------------------------------------------------------------------
# Reference + test
# --------------------------------------------------------------------------
def reference(text, adj, weight, bias):
    hidden = jnp.matmul(text, weight)
    denom = jnp.sum(adj, axis=2, keepdims=True) + 1.0
    out = jnp.matmul(adj, hidden) / denom
    return out + bias


if __name__ == "__main__":
    B, N, Fin, Fout = 2, 8, 32, 32

    key = jax.random.PRNGKey(0)
    k1, k2, k3, k4 = jax.random.split(key, 4)

    text = jax.random.normal(k1, (B, N, Fin), dtype=jnp.float32)
    adj = jax.random.uniform(k2, (B, N, N), dtype=jnp.float32)
    # Deterministic synthetic parameters (module __init__ only defines shapes).
    weight = jax.random.normal(k3, (Fin, Fout), dtype=jnp.float32) * 0.1
    bias = jax.random.normal(k4, (Fout,), dtype=jnp.float32) * 0.1

    out = graph_convolution(text, adj, weight, bias)
    out = jax.block_until_ready(out)

    ref = reference(text, adj, weight, bias)
    assert out.shape == (B, N, Fout)
    assert jnp.allclose(out, ref, atol=1e-5, rtol=1e-5), "mismatch vs reference"

    print("KERNEL_OK")
</pallas_src>

<mosaic_0001>
module attributes {stable_mosaic.version = 11 : i64} {
  func.func @_hidden_kernel(%arg0: i32, %arg1: memref<256x128xf32, #tpu.memory_space<vmem>>, %arg2: memref<128x128xf32, #tpu.memory_space<vmem>>, %arg3: memref<256x128xf32, #tpu.memory_space<vmem>>) attributes {dimension_semantics = [#tpu.dimension_semantics<parallel>], iteration_bounds = array<i64: 1>, scalar_prefetch = 0 : i64, scratch_operands = 0 : i64, tpu.core_type = #tpu.core_type<tc>, window_params = [{transform_indices = @transform_0, window_bounds = array<i64: 256, 128>}, {pipeline_mode = #tpu.pipeline_mode<synchronous>, transform_indices = @transform_1, window_bounds = array<i64: 128, 128>}, {transform_indices = @transform_2, window_bounds = array<i64: 256, 128>}]} {
    %c0 = arith.constant 0 : index
    %c0_0 = arith.constant 0 : index
    %0 = vector.load %arg1[%c0, %c0_0] : memref<256x128xf32, #tpu.memory_space<vmem>>, vector<256x128xf32>
    %c0_1 = arith.constant 0 : index
    %c0_2 = arith.constant 0 : index
    %1 = vector.load %arg2[%c0_1, %c0_2] : memref<128x128xf32, #tpu.memory_space<vmem>>, vector<128x128xf32>
    %cst = arith.constant dense<0.000000e+00> : vector<256x128xf32>
    %2 = tpu.matmul %0, %1, %cst {dimension_numbers = #tpu.dot_dimension_numbers<[1], [0], [0], [1], [0, 0, 1, 1], [], []>} : vector<256x128xf32>, vector<128x128xf32>, vector<256x128xf32> -> vector<256x128xf32>
    %c0_3 = arith.constant 0 : index
    %c0_4 = arith.constant 0 : index
    %3 = vector.load %arg3[%c0_3, %c0_4] : memref<256x128xf32, #tpu.memory_space<vmem>>, vector<256x128xf32>
    tpu.vector_store %arg3[%c0_3, %c0_4], %2 {strides = array<i32>} : memref<256x128xf32, #tpu.memory_space<vmem>>, vector<256x128xf32>,
    return
  }
  func.func @transform_0(%arg0: i32) -> (i32, i32) {
    %c0_i32 = arith.constant 0 : i32
    %c0_i32_0 = arith.constant 0 : i32
    return %arg0, %c0_i32 : i32, i32
  }
  func.func @transform_1(%arg0: i32) -> (i32, i32) {
    %c0_i32 = arith.constant 0 : i32
    %c0_i32_0 = arith.constant 0 : i32
    %c0_i32_1 = arith.constant 0 : i32
    return %c0_i32, %c0_i32_0 : i32, i32
  }
  func.func @transform_2(%arg0: i32) -> (i32, i32) {
    %c0_i32 = arith.constant 0 : i32
    %c0_i32_0 = arith.constant 0 : i32
    return %arg0, %c0_i32 : i32, i32
  }
}

</mosaic_0001>

<bundles_post_ra>
// kernel: tpu_custom_call.1
= control target key start
LH: loop header
LB: loop body
LE: loop exit
PB: predicated region body
PF: predicated region fallthrough
CT: control target
= control target key end

     0   :  { %7 = vsyncpa [#allocation3], 0  ;;  %s632_s0 = inlined_call_operand.hbm [shape: f32[256,128], index: 0, kind: input, shape index: {}]   ;;  %s633_s1 = inlined_call_operand.hbm [shape: f32[128,128], index: 1, kind: input, shape index: {}]   ;;  %s634_s2 = inlined_call_operand.hbm [shape: f32[256,128], index: 2, kind: output, shape index: {}]  }
   0x1   :  { %8 = vsyncpa [#allocation6], 0 }
   0x2   :  { %9 = vsyncpa [#allocation4], 0  ;;  %s594_s9 = smov [#allocation2]  }
   0x3   :  { %s15_s10 = sshll.u32 %s594_s9, 4  ;;  %s16_s10 = int_to_ptr.vmem [resolvable:$true] %s15_s10 }
   0x4   :  { %s536_s11 = scalar_lea.vmem %s16_s10, 4096  ;;  %p541_p1 = scmp.lt.s32.totalorder %s16_s10, %s16_s10 }
   0x5   :  { %p537_p0 = scmp.ne.s32.totalorder %s16_s10, %s536_s11  ;;  %p542_p2 = scmp.lt.s32.totalorder %s536_s11, %s536_s11 }
   0x7   :  { %p543_p3 = por %p542_p2, %p541_p1 }
   0x9   :  { %p544_p4 = pnand %p543_p3, %p537_p0 }
   0xb   :  { %547 = shalt.err (!%p544_p4)
}
   0xc   :  { %s595_s12 = smov 128   ;;  %s596_s13 = smov 8  }
   0xd   :  { %21 = dma.hbm_to_vmem [thread:$0]  %s632_s0, 4096, %s16_s10, [#allocation3], %s595_s12, %s595_s12, %s596_s13  }
   0xe   :  { %s597_s16 = smov [#allocation5]  }
   0xf   :  { %s27_s17 = sshll.u32 %s597_s16, 4  ;;  %s28_s17 = int_to_ptr.vmem [resolvable:$true] %s27_s17 }
  0x10   :  { %s556_s18 = scalar_lea.vmem %s28_s17, 2048  ;;  %p561_p6 = scmp.lt.s32.totalorder %s28_s17, %s28_s17 }
  0x11   :  { %p557_p5 = scmp.ne.s32.totalorder %s28_s17, %s556_s18  ;;  %p562_p7 = scmp.lt.s32.totalorder %s556_s18, %s556_s18 }
  0x13   :  { %p563_p8 = por %p562_p7, %p561_p6 }
  0x15   :  { %p564_p9 = pnand %p563_p8, %p557_p5 }
  0x17   :  { %567 = shalt.err (!%p564_p9)
}
  0x18   :  { %33 = dma.hbm_to_vmem [thread:$0]  %s633_s1, 2048, %s28_s17, [#allocation6], %s595_s12, %s595_s12, %s596_s13  }
  0x19   :  { %588 = dma.done.wait [#allocation3], 4096  }
  0x1a   :  { %589 = vsyncadd [#allocation3], 4294963200 }
  0x1b   :  { %590 = dma.done.wait [#allocation6], 2048  }
  0x1c   :  { %591 = vsyncadd [#allocation6], 4294965248  ;;  %v87_v0 = vld [vmem:[#allocation5 + $0x78] sm:$0xff]  ;;  %v86_v1 = vld [vmem:[#allocation5 + $0x70] sm:$0xff]  ;;  %s598_s0 = smov [#allocation7]  }
  0x1d   :  { %411 = vmatprep.subr.mxu0 %v87_v0  ;;  %491 = vmatprep.subr.mxu1 %v87_v0  ;;  %v85_v2 = vld [vmem:[#allocation5 + $0x68] sm:$0xff]  ;;  %v84_v3 = vld [vmem:[#allocation5 + $0x60] sm:$0xff]  ;;  %v83_v4 = vld [vmem:[#allocation5 + $0x58] sm:$0xff]  ;;  %s350_s1 = sshll.u32 %s598_s0, 4  ;;  %s351_s1 = int_to_ptr.vmem [resolvable:$true] %s350_s1 }
  0x1e   :  { %412 = vmatpush3.msra.mxu0 %v87_v0  ;;  %507 = vmatpush3.msra.mxu1 %v87_v0  ;;  %v82_v5 = vld [vmem:[#allocation5 + $0x50] sm:$0xff]  ;;  %v81_v6 = vld [vmem:[#allocation5 + $0x48] sm:$0xff]  ;;  %v80_v7 = vld [vmem:[#allocation5 + $0x40] sm:$0xff]  ;;  %s568_s21 = scalar_lea.vmem %s351_s1, 4096  ;;  %p573_p11 = scmp.lt.s32.totalorder %s351_s1, %s351_s1 }
  0x1f   :  { %413 = vmatprep.subr.mxu0 %v86_v1  ;;  %492 = vmatprep.subr.mxu1 %v86_v1  ;;  %v79_v8 = vld [vmem:[#allocation5 + $0x38] sm:$0xff]  ;;  %v78_v9 = vld [vmem:[#allocation5 + $0x30] sm:$0xff]  ;;  %v77_v10 = vld [vmem:[#allocation5 + $0x28] sm:$0xff]  ;;  %p569_p10 = scmp.ne.s32.totalorder %s351_s1, %s568_s21  ;;  %p574_p12 = scmp.lt.s32.totalorder %s568_s21, %s568_s21 }
  0x20   :  { %414 = vmatpush3.msra.mxu0 %v86_v1  ;;  %508 = vmatpush3.msra.mxu1 %v86_v1  ;;  %v76_v11 = vld [vmem:[#allocation5 + $0x20] sm:$0xff]  ;;  %v75_v12 = vld [vmem:[#allocation5 + $0x18] sm:$0xff]  ;;  %v74_v13 = vld [vmem:[#allocation5 + $0x10] sm:$0xff] }
  0x21   :  { %415 = vmatprep.subr.mxu0 %v85_v2  ;;  %493 = vmatprep.subr.mxu1 %v85_v2  ;;  %v73_v14 = vld [vmem:[#allocation5 + $0x8] sm:$0xff]  ;;  %v72_v15 = vld [vmem:[#allocation5] sm:$0xff]  ;;  %v42_v20 = vld [vmem:[#allocation2 + $0x10] sm:$0xff]  ;;  %p575_p13 = por %p574_p12, %p573_p11 }
  0x22   :  { %416 = vmatpush3.msra.mxu0 %v85_v2  ;;  %509 = vmatpush3.msra.mxu1 %v85_v2  ;;  %v40_v16 = vld [vmem:[#allocation2] sm:$0xff]  ;;  %v41_v18 = vld [vmem:[#allocation2 + $0x8] sm:$0xff]  ;;  %v58_v21 = vld [vmem:[#allocation2 + $0x90] sm:$0xff] }
  0x23   :  { %417 = vmatprep.subr.mxu0 %v84_v3  ;;  %494 = vmatprep.subr.mxu1 %v84_v3  ;;  %v56_v17 = vld [vmem:[#allocation2 + $0x80] sm:$0xff]  ;;  %v57_v19 = vld [vmem:[#allocation2 + $0x88] sm:$0xff]  ;;  %v43_v22 = vld [vmem:[#allocation2 + $0x18] sm:$0xff]  ;;  %p576_p0 = pnand %p575_p13, %p569_p10 }
  0x24   :  { %418 = vmatpush3.msra.mxu0 %v84_v3  ;;  %510 = vmatpush3.msra.mxu1 %v84_v3  ;;  %v59_v23 = vld [vmem:[#allocation2 + $0x98] sm:$0xff]  ;;  %v44_v24 = vld [vmem:[#allocation2 + $0x20] sm:$0xff]  ;;  %v45_v26 = vld [vmem:[#allocation2 + $0x28] sm:$0xff] }
  0x25   :  { %419 = vmatprep.subr.mxu0 %v83_v4  ;;  %495 = vmatprep.subr.mxu1 %v83_v4  ;;  %v60_v25 = vld [vmem:[#allocation2 + $0xa0] sm:$0xff]  ;;  %v61_v27 = vld [vmem:[#allocation2 + $0xa8] sm:$0xff]  ;;  %v46_v28 = vld [vmem:[#allocation2 + $0x30] sm:$0xff] }
  0x26   :  { %420 = vmatpush3.msra.mxu0 %v83_v4  ;;  %511 = vmatpush3.msra.mxu1 %v83_v4  ;;  %v62_v29 = vld [vmem:[#allocation2 + $0xb0] sm:$0xff]  ;;  %v47_v30 = vld [vmem:[#allocation2 + $0x38] sm:$0xff]  ;;  %v48_v32 = vld [vmem:[#allocation2 + $0x40] sm:$0xff] }
  0x27   :  { %421 = vmatprep.subr.mxu0 %v82_v5  ;;  %496 = vmatprep.subr.mxu1 %v82_v5  ;;  %v63_v31 = vld [vmem:[#allocation2 + $0xb8] sm:$0xff]  ;;  %v64_v33 = vld [vmem:[#allocation2 + $0xc0] sm:$0xff]  ;;  %v49_v34 = vld [vmem:[#allocation2 + $0x48] sm:$0xff] }
  0x28   :  { %422 = vmatpush3.msra.mxu0 %v82_v5  ;;  %512 = vmatpush3.msra.mxu1 %v82_v5  ;;  %v65_v35 = vld [vmem:[#allocation2 + $0xc8] sm:$0xff]  ;;  %v50_v36 = vld [vmem:[#allocation2 + $0x50] sm:$0xff]  ;;  %v51_v38 = vld [vmem:[#allocation2 + $0x58] sm:$0xff] }
  0x29   :  { %423 = vmatprep.subr.mxu0 %v81_v6  ;;  %497 = vmatprep.subr.mxu1 %v81_v6  ;;  %v66_v37 = vld [vmem:[#allocation2 + $0xd0] sm:$0xff]  ;;  %v67_v39 = vld [vmem:[#allocation2 + $0xd8] sm:$0xff]  ;;  %v52_v40 = vld [vmem:[#allocation2 + $0x60] sm:$0xff] }
  0x2a   :  { %424 = vmatpush3.msra.mxu0 %v81_v6  ;;  %513 = vmatpush3.msra.mxu1 %v81_v6  ;;  %v68_v41 = vld [vmem:[#allocation2 + $0xe0] sm:$0xff]  ;;  %v53_v42 = vld [vmem:[#allocation2 + $0x68] sm:$0xff]  ;;  %v54_v44 = vld [vmem:[#allocation2 + $0x70] sm:$0xff] }
  0x2b   :  { %425 = vmatprep.subr.mxu0 %v80_v7  ;;  %498 = vmatprep.subr.mxu1 %v80_v7  ;;  %v69_v43 = vld [vmem:[#allocation2 + $0xe8] sm:$0xff]  ;;  %v70_v45 = vld [vmem:[#allocation2 + $0xf0] sm:$0xff]  ;;  %v55_v46 = vld [vmem:[#allocation2 + $0x78] sm:$0xff] }
  0x2c   :  { %426 = vmatpush3.msra.mxu0 %v80_v7  ;;  %514 = vmatpush3.msra.mxu1 %v80_v7  ;;  %v71_v47 = vld [vmem:[#allocation2 + $0xf8] sm:$0xff] }
  0x2d   :  { %427 = vmatprep.subr.mxu0 %v79_v8  ;;  %499 = vmatprep.subr.mxu1 %v79_v8 }
  0x2e   :  { %428 = vmatpush3.msra.mxu0 %v79_v8  ;;  %515 = vmatpush3.msra.mxu1 %v79_v8 }
  0x2f   :  { %429 = vmatprep.subr.mxu0 %v78_v9  ;;  %500 = vmatprep.subr.mxu1 %v78_v9 }
  0x30   :  { %430 = vmatpush3.msra.mxu0 %v78_v9  ;;  %516 = vmatpush3.msra.mxu1 %v78_v9 }
  0x31   :  { %431 = vmatprep.subr.mxu0 %v77_v10  ;;  %501 = vmatprep.subr.mxu1 %v77_v10 }
  0x32   :  { %432 = vmatpush3.msra.mxu0 %v77_v10  ;;  %517 = vmatpush3.msra.mxu1 %v77_v10 }
  0x33   :  { %433 = vmatprep.subr.mxu0 %v76_v11  ;;  %502 = vmatprep.subr.mxu1 %v76_v11 }
  0x34   :  { %434 = vmatpush3.msra.mxu0 %v76_v11  ;;  %518 = vmatpush3.msra.mxu1 %v76_v11 }
  0x35   :  { %435 = vmatprep.subr.mxu0 %v75_v12  ;;  %503 = vmatprep.subr.mxu1 %v75_v12 }
  0x36   :  { %436 = vmatpush3.msra.mxu0 %v75_v12  ;;  %519 = vmatpush3.msra.mxu1 %v75_v12 }
  0x37   :  { %437 = vmatprep.subr.mxu0 %v74_v13  ;;  %504 = vmatprep.subr.mxu1 %v74_v13 }
  0x38   :  { %438 = vmatpush3.msra.mxu0 %v74_v13  ;;  %520 = vmatpush3.msra.mxu1 %v74_v13 }
  0x39   :  { %439 = vmatprep.subr.mxu0 %v73_v14  ;;  %505 = vmatprep.subr.mxu1 %v73_v14 }
  0x3a   :  { %440 = vmatpush3.msra.mxu0 %v73_v14  ;;  %521 = vmatpush3.msra.mxu1 %v73_v14 }
  0x3b   :  { %441 = vmatprep.subr.mxu0 %v72_v15  ;;  %506 = vmatprep.subr.mxu1 %v72_v15 }
  0x3c   :  { %442 = vmatpush3.msra.mxu0 %v72_v15  ;;  %522 = vmatpush3.msra.mxu1 %v72_v15 }
  0x3d   :  { %443 = vmatprep.mubr.f32.mxu0 %v40_v16  ;;  %467 = vmatprep.mubr.f32.mxu1 %v56_v17 }
  0x3e   :  { %444 = vmatmul.mubr.f32.vlgmr.msra.gmra.mxu0 %v41_v18  ;;  %468 = vmatmul.mubr.f32.vlgmr.msra.gmra.mxu1 %v57_v19 }
  0x3f   :  { %446 = vmatprep.mubr.f32.mxu0 %v42_v20  ;;  %470 = vmatprep.mubr.f32.mxu1 %v58_v21 }
  0x42   :  { %447 = vmatmul.mubr.f32.gmra.mxu0 %v43_v22  ;;  %471 = vmatmul.mubr.f32.gmra.mxu1 %v59_v23 }
  0x43   :  { %449 = vmatprep.mubr.f32.mxu0 %v44_v24  ;;  %473 = vmatprep.mubr.f32.mxu1 %v60_v25 }
  0x46   :  { %450 = vmatmul.mubr.f32.gmra.mxu0 %v45_v26  ;;  %474 = vmatmul.mubr.f32.gmra.mxu1 %v61_v27 }
  0x47   :  { %452 = vmatprep.mubr.f32.mxu0 %v46_v28  ;;  %476 = vmatprep.mubr.f32.mxu1 %v62_v29 }
  0x4a   :  { %453 = vmatmul.mubr.f32.gmra.mxu0 %v47_v30  ;;  %477 = vmatmul.mubr.f32.gmra.mxu1 %v63_v31 }
  0x4b   :  { %455 = vmatprep.mubr.f32.mxu0 %v48_v32  ;;  %479 = vmatprep.mubr.f32.mxu1 %v64_v33 }
  0x4e   :  { %456 = vmatmul.mubr.f32.gmra.mxu0 %v49_v34  ;;  %480 = vmatmul.mubr.f32.gmra.mxu1 %v65_v35 }
  0x4f   :  { %458 = vmatprep.mubr.f32.mxu0 %v50_v36  ;;  %482 = vmatprep.mubr.f32.mxu1 %v66_v37 }
  0x52   :  { %459 = vmatmul.mubr.f32.gmra.mxu0 %v51_v38  ;;  %483 = vmatmul.mubr.f32.gmra.mxu1 %v67_v39 }
  0x53   :  { %461 = vmatprep.mubr.f32.mxu0 %v52_v40  ;;  %485 = vmatprep.mubr.f32.mxu1 %v68_v41 }
  0x56   :  { %462 = vmatmul.mubr.f32.gmra.mxu0 %v53_v42  ;;  %486 = vmatmul.mubr.f32.gmra.mxu1 %v69_v43 }
  0x57   :  { %464 = vmatprep.mubr.f32.mxu0 %v54_v44  ;;  %488 = vmatprep.mubr.f32.mxu1 %v70_v45 }
  0x5a   :  { %465 = vmatmul.mubr.f32.gmra.mxu0 %v55_v46  ;;  %489 = vmatmul.mubr.f32.gmra.mxu1 %v71_v47 }
  0xfe   :  { %v445_v48 = vpop.f32.mrf.mxu0  ;;  %v469_v49 = vpop.f32.mrf.mxu1 }
  0xff   :  { %314 = vst [vmem:[#allocation7 + $0x8] sm:$0xff] %v445_v48  ;;  %330 = vst [vmem:[#allocation7 + $0x88] sm:$0xff] %v469_v49 }
 0x100   :  { %v154_v50 = vpop.f32.mrf.mxu0  ;;  %v234_v51 = vpop.f32.mrf.mxu1 }
 0x101   :  { %313 = vst [vmem:[#allocation7] sm:$0xff] %v154_v50  ;;  %329 = vst [vmem:[#allocation7 + $0x80] sm:$0xff] %v234_v51 }
 0x102   :  { %v448_v52 = vpop.f32.mrf.mxu0  ;;  %v472_v53 = vpop.f32.mrf.mxu1 }
 0x103   :  { %316 = vst [vmem:[#allocation7 + $0x18] sm:$0xff] %v448_v52  ;;  %332 = vst [vmem:[#allocation7 + $0x98] sm:$0xff] %v472_v53 }
 0x104   :  { %v164_v54 = vpop.f32.mrf.mxu0  ;;  %v244_v55 = vpop.f32.mrf.mxu1 }
 0x105   :  { %315 = vst [vmem:[#allocation7 + $0x10] sm:$0xff] %v164_v54  ;;  %331 = vst [vmem:[#allocation7 + $0x90] sm:$0xff] %v244_v55 }
 0x106   :  { %v451_v56 = vpop.f32.mrf.mxu0  ;;  %v475_v57 = vpop.f32.mrf.mxu1 }
 0x107   :  { %318 = vst [vmem:[#allocation7 + $0x28] sm:$0xff] %v451_v56  ;;  %334 = vst [vmem:[#allocation7 + $0xa8] sm:$0xff] %v475_v57 }
 0x108   :  { %v174_v58 = vpop.f32.mrf.mxu0  ;;  %v254_v59 = vpop.f32.mrf.mxu1 }
 0x109   :  { %317 = vst [vmem:[#allocation7 + $0x20] sm:$0xff] %v174_v58  ;;  %333 = vst [vmem:[#allocation7 + $0xa0] sm:$0xff] %v254_v59 }
 0x10a   :  { %v454_v60 = vpop.f32.mrf.mxu0  ;;  %v478_v61 = vpop.f32.mrf.mxu1 }
 0x10b   :  { %320 = vst [vmem:[#allocation7 + $0x38] sm:$0xff] %v454_v60  ;;  %336 = vst [vmem:[#allocation7 + $0xb8] sm:$0xff] %v478_v61 }
 0x10c   :  { %v184_v62 = vpop.f32.mrf.mxu0  ;;  %v264_v63 = vpop.f32.mrf.mxu1 }
 0x10d   :  { %319 = vst [vmem:[#allocation7 + $0x30] sm:$0xff] %v184_v62  ;;  %335 = vst [vmem:[#allocation7 + $0xb0] sm:$0xff] %v264_v63 }
 0x10e   :  { %v457_v0 = vpop.f32.mrf.mxu0  ;;  %v481_v1 = vpop.f32.mrf.mxu1 }
 0x10f   :  { %322 = vst [vmem:[#allocation7 + $0x48] sm:$0xff] %v457_v0  ;;  %338 = vst [vmem:[#allocation7 + $0xc8] sm:$0xff] %v481_v1 }
 0x110   :  { %v194_v2 = vpop.f32.mrf.mxu0  ;;  %v274_v3 = vpop.f32.mrf.mxu1 }
 0x111   :  { %321 = vst [vmem:[#allocation7 + $0x40] sm:$0xff] %v194_v2  ;;  %337 = vst [vmem:[#allocation7 + $0xc0] sm:$0xff] %v274_v3 }
 0x112   :  { %v460_v4 = vpop.f32.mrf.mxu0  ;;  %v484_v5 = vpop.f32.mrf.mxu1 }
 0x113   :  { %324 = vst [vmem:[#allocation7 + $0x58] sm:$0xff] %v460_v4  ;;  %340 = vst [vmem:[#allocation7 + $0xd8] sm:$0xff] %v484_v5 }
 0x114   :  { %v204_v6 = vpop.f32.mrf.mxu0  ;;  %v284_v7 = vpop.f32.mrf.mxu1 }
 0x115   :  { %323 = vst [vmem:[#allocation7 + $0x50] sm:$0xff] %v204_v6  ;;  %339 = vst [vmem:[#allocation7 + $0xd0] sm:$0xff] %v284_v7 }
 0x116   :  { %v463_v8 = vpop.f32.mrf.mxu0  ;;  %v487_v9 = vpop.f32.mrf.mxu1 }
 0x117   :  { %326 = vst [vmem:[#allocation7 + $0x68] sm:$0xff] %v463_v8  ;;  %342 = vst [vmem:[#allocation7 + $0xe8] sm:$0xff] %v487_v9 }
 0x118   :  { %v214_v10 = vpop.f32.mrf.mxu0  ;;  %v294_v11 = vpop.f32.mrf.mxu1 }
 0x119   :  { %325 = vst [vmem:[#allocation7 + $0x60] sm:$0xff] %v214_v10  ;;  %341 = vst [vmem:[#allocation7 + $0xe0] sm:$0xff] %v294_v11 }
 0x11a   :  { %v466_v12 = vpop.f32.mrf.mxu0  ;;  %v490_v13 = vpop.f32.mrf.mxu1 }
 0x11b   :  { %328 = vst [vmem:[#allocation7 + $0x78] sm:$0xff] %v466_v12  ;;  %344 = vst [vmem:[#allocation7 + $0xf8] sm:$0xff] %v490_v13 }
 0x11c   :  { %v224_v14 = vpop.f32.mrf.mxu0  ;;  %v304_v15 = vpop.f32.mrf.mxu1 }
 0x11d   :  { %327 = vst [vmem:[#allocation7 + $0x70] sm:$0xff] %v224_v14  ;;  %343 = vst [vmem:[#allocation7 + $0xf0] sm:$0xff] %v304_v15 }
 0x11e   :  { %579 = shalt.err (!%p576_p0)
}
 0x11f   :  { %356 = dma.vmem_to_hbm [thread:$0]  %s351_s1, 4096, %s634_s2, [#allocation4], %s595_s12, %s595_s12, %s596_s13  }
 0x120   :  { %592 = dma.done.wait [#allocation4], 4096  }
 0x121   :  { %593 = vsyncadd [#allocation4], 4294963200 }
 0x122   :  { %360 = vsyncpa [#allocation3], 1 }
 0x123   :  { %361 = vsyncpa [#allocation6], 1 }
 0x124   :  { %362 = vsyncpa [#allocation4], 1 }

</bundles_post_ra>
